<compile_context>
chip_gen: v7x
topology: tpu7x:2x2x1
jax: 0.10.0
libtpu: 0.0.40
codegen_flags: <defaults>
</compile_context>

<pallas_src>
import functools

import jax
import jax.numpy as jnp
from jax.experimental import pallas as pl
from jax.experimental.pallas import tpu as pltpu

_EPS = 1e-6


def _round_up(v, m):
    return ((v + m - 1) // m) * m


def _hw_budgets():
    """(streamed working-set budget, scoped-VMEM limit) per TPU generation."""
    try:
        kind = jax.devices()[0].device_kind.lower()
    except Exception:
        kind = ""
    if kind and "7" not in kind:
        # v4 / v5e / v5p / v6e: 128 MiB physical VMEM -> allow larger tiles so the
        # 512-2048 row sweet spot is reachable even for wide D.
        return 16 * 1024 * 1024, 64 * 1024 * 1024
    # v7x (64 MiB physical, 32 MiB scoped default) or unknown: stay conservative.
    return 8 * 1024 * 1024, 32 * 1024 * 1024


def _choose_block_rows(n_rows, row_bytes, n_streams, budget, requested, sublane, cap):
    if requested is not None:
        tm = max(sublane, (int(requested) // sublane) * sublane)
    else:
        # n_streams double-buffered tiles must fit the working-set budget.
        tm = budget // (2 * n_streams * max(row_bytes, 1))
        tm = max(sublane, min(cap, (tm // sublane) * sublane))
    return min(tm, _round_up(n_rows, sublane))


def _compiler_params(semantics, vmem_limit):
    return pltpu.CompilerParams(dimension_semantics=semantics,
                                vmem_limit_bytes=vmem_limit)


# ---------------------------------------------------------------------------
# Phase 0: streamed global reduction (sharded across cores on v7x).
# ---------------------------------------------------------------------------
def _stats_kernel(x_ref, colsum_ref, sumsq_ref, *, n_rows, block_rows,
                  tiles_per_shard, need_sumsq, may_mask):
    c = pl.program_id(1)

    @pl.when(c == 0)
    def _init():
        colsum_ref[...] = jnp.zeros_like(colsum_ref)
        sumsq_ref[...] = jnp.zeros_like(sumsq_ref)

    x = x_ref[...].astype(jnp.float32)

    def _acc(v):
        colsum_ref[...] += jnp.sum(v, axis=0, keepdims=True)
        if need_sumsq:
            sumsq_ref[...] += jnp.sum(v * v, keepdims=True)

    if may_mask:
        g = pl.program_id(0) * tiles_per_shard + c      # global row-tile index
        rem = n_rows - g * block_rows                   # valid rows in this tile

        @pl.when(rem >= block_rows)                     # full interior tile: no mask
        def _full():
            _acc(x)

        @pl.when(rem < block_rows)                      # ragged / duplicated edge tile
        def _edge():
            rid = jax.lax.broadcasted_iota(jnp.int32, x.shape, 0)
            _acc(jnp.where(rid < rem, x, 0.0))
    else:
        _acc(x)


def _run_stats(xw, block_rows, need_sumsq, vmem_limit):
    nw, dw = xw.shape
    nb = pl.cdiv(nw, block_rows)
    # Split the streamed reduction across v7x's 2 TensorCores; on single-core
    # chips this is just two sequential chunks with separate partial accumulators.
    shards = 2 if nb >= 4 else 1
    tiles_per_shard = pl.cdiv(nb, shards)
    may_mask = (nw % block_rows != 0) or (shards * tiles_per_shard != nb)

    kernel = functools.partial(
        _stats_kernel, n_rows=nw, block_rows=block_rows,
        tiles_per_shard=tiles_per_shard, need_sumsq=need_sumsq, may_mask=may_mask)

    def x_map(s, c):
        # Clamp so duplicated tail tiles (odd tile count) stay in bounds; they are
        # fully masked inside the kernel (rem <= 0).
        return (jnp.minimum(s * tiles_per_shard + c, nb - 1), 0)

    return pl.pallas_call(
        kernel,
        out_shape=(jax.ShapeDtypeStruct((shards, 1, dw), jnp.float32),
                   jax.ShapeDtypeStruct((shards, 1, 1), jnp.float32)),
        grid=(shards, tiles_per_shard),
        in_specs=[pl.BlockSpec((block_rows, dw), x_map)],
        out_specs=(pl.BlockSpec((None, 1, dw), lambda s, c: (s, 0, 0)),
                   pl.BlockSpec((None, 1, 1), lambda s, c: (s, 0, 0))),
        compiler_params=_compiler_params(("parallel", "arbitrary"), vmem_limit),
    )(xw)


# ---------------------------------------------------------------------------
# Phase 1: streamed normalization with the finalize fused into the kernel.
# ---------------------------------------------------------------------------
def _packed_col_mean(colsum, inv_n, k, d):
    # colsum: (1, k*d) packed partial column sums.  Fold the k segments and
    # broadcast the folded mean back across every segment via exact lane rolls
    # (sum over j of roll by j*d hits each segment once at the same offset).
    total = colsum
    for j in range(1, k):
        total = total + pltpu.roll(colsum, shift=j * d, axis=1)
    return total * inv_n


def _segment_matrix(dw, d):
    # (dw, dw) block-diagonal ones: M[a, b] = 1 iff a // d == b // d.  Multiplying
    # the squared tile by M yields each logical row's sum of squares, already
    # broadcast across its d lanes (lane-dense, no relayout).
    a = jax.lax.broadcasted_iota(jnp.int32, (dw, dw), 0)
    b = jax.lax.broadcasted_iota(jnp.int32, (dw, dw), 1)
    return (a // d == b // d).astype(jnp.float32)


def _apply_pn_kernel(x_ref, colsum_ref, sumsq_ref, o_ref, *, inv_n, scale, k, d):
    x = x_ref[...].astype(jnp.float32)
    colsum = jnp.sum(colsum_ref[...], axis=0)        # fold per-core partials -> (1, dw)
    sumsq = jnp.sum(sumsq_ref[...])                  # scalar sum(x^2)
    cm = _packed_col_mean(colsum, inv_n, k, d)       # column mean (tiled k times)
    mu2 = jnp.sum(cm * cm) * (1.0 / k)               # ||mu||^2 (cm repeats each value k x)
    # mean_i ||x_i - mu||^2 = E[x^2] - ||mu||^2; clamp against f32 cancellation.
    mean_sq = jnp.maximum(sumsq * inv_n - mu2, 0.0)
    coef = scale * jax.lax.rsqrt(_EPS + mean_sq)     # scalar, EUP
    o_ref[...] = ((x - cm) * coef).astype(o_ref.dtype)


def _apply_pnsi_kernel(x_ref, colsum_ref, o_ref, *, inv_n, scale, k, d):
    x = x_ref[...].astype(jnp.float32)
    colsum = jnp.sum(colsum_ref[...], axis=0)
    cm = _packed_col_mean(colsum, inv_n, k, d)
    xc = x - cm
    if k > 1:
        seg = _segment_matrix(k * d, d)
        ssq = jnp.dot(xc * xc, seg, preferred_element_type=jnp.float32,
                      precision=jax.lax.Precision.HIGHEST)
    else:
        ssq = jnp.sum(xc * xc, axis=1, keepdims=True)
    coef = scale * jax.lax.rsqrt(_EPS + ssq)
    o_ref[...] = (xc * coef).astype(o_ref.dtype)


def _apply_pnscs_kernel(x_ref, colsum_ref, o_ref, *, inv_n, scale, k, d):
    x = x_ref[...].astype(jnp.float32)
    colsum = jnp.sum(colsum_ref[...], axis=0)
    cm = _packed_col_mean(colsum, inv_n, k, d)
    if k > 1:
        seg = _segment_matrix(k * d, d)
        ssq = jnp.dot(x * x, seg, preferred_element_type=jnp.float32,
                      precision=jax.lax.Precision.HIGHEST)
    else:
        ssq = jnp.sum(x * x, axis=1, keepdims=True)
    coef = scale * jax.lax.rsqrt(_EPS + ssq)
    o_ref[...] = (x * coef - cm).astype(o_ref.dtype)


def _run_apply(kernel_fn, xw, extras, block_rows, vmem_limit):
    nw, dw = xw.shape
    in_specs = [pl.BlockSpec((block_rows, dw), lambda i: (i, 0))]
    in_specs += [pl.BlockSpec(e.shape, lambda i: (0, 0, 0)) for e in extras]
    return pl.pallas_call(
        kernel_fn,
        out_shape=jax.ShapeDtypeStruct((nw, dw), xw.dtype),
        grid=(pl.cdiv(nw, block_rows),),
        in_specs=in_specs,
        out_specs=pl.BlockSpec((block_rows, dw), lambda i: (i, 0)),
        compiler_params=_compiler_params(("parallel",), vmem_limit),
    )(xw, *extras)


# ---------------------------------------------------------------------------
# Public entry point.
# ---------------------------------------------------------------------------
def pair_norm(x, mode="PN", scale=1.0, *, block_rows=None):
    """PairNorm forward pass. x: [N, D] = [num_nodes, feature_dim]."""
    assert mode in ["None", "PN", "PN-SI", "PN-SCS"]
    if mode == "None":
        return x

    n, d = x.shape
    scale = float(scale)

    # Lane-dense packing for narrow D (all modes): fold k = 128/D logical rows into
    # one 128-lane row so every streamed load/store is unmasked.  Ragged N is
    # zero-padded (padded rows contribute 0 to the stats, 1/N uses the true count,
    # and the pad is sliced off the output).
    k = 1
    if d < 128 and 128 % d == 0:
        k = 128 // d
    if k > 1:
        n_pad = _round_up(n, k)
        xp = jnp.pad(x, ((0, n_pad - n), (0, 0))) if n_pad != n else x
        xw = xp.reshape(n_pad // k, k * d)
    else:
        xw = x
    nw, dw = xw.shape

    budget, vmem_limit = _hw_budgets()
    itemsize = jnp.dtype(x.dtype).itemsize
    sublane = max(8, 32 // max(itemsize, 1))          # 8 f32, 16 bf16, 32 int8/fp8
    row_bytes = dw * itemsize
    # Apply pass streams input + output (4 buffered tiles); stats streams input only
    # (2 buffered tiles) so it gets roughly 2x the rows per grid step.
    tm_apply = _choose_block_rows(nw, row_bytes, 2, budget, block_rows, sublane, 2048)
    tm_stats = _choose_block_rows(nw, row_bytes, 1, budget, block_rows, sublane, 4096)

    # Phase 0: streamed global reduction (col sums; sum(x^2) only for 'PN').
    colsum, sumsq = _run_stats(xw, tm_stats, need_sumsq=(mode == "PN"),
                               vmem_limit=vmem_limit)

    # Phase 1: streamed normalization; the finalize is fused into the kernel so the
    # second pallas_call consumes the raw partial sums directly.
    inv_n = 1.0 / n
    if mode == "PN":
        kern = functools.partial(_apply_pn_kernel, inv_n=inv_n, scale=scale, k=k, d=d)
        out = _run_apply(kern, xw, (colsum, sumsq), tm_apply, vmem_limit)
    elif mode == "PN-SI":
        kern = functools.partial(_apply_pnsi_kernel, inv_n=inv_n, scale=scale, k=k, d=d)
        out = _run_apply(kern, xw, (colsum,), tm_apply, vmem_limit)
    else:  # 'PN-SCS'
        kern = functools.partial(_apply_pnscs_kernel, inv_n=inv_n, scale=scale, k=k, d=d)
        out = _run_apply(kern, xw, (colsum,), tm_apply, vmem_limit)

    if k > 1:
        out = out.reshape(-1, d)
        if out.shape[0] != n:
            out = out[:n]
    return out


def _pair_norm_ref(x, mode="PN", scale=1.0):
    # Pure-JAX reference mirroring the PyTorch module exactly.
    if mode == "None":
        return x
    col_mean = x.mean(axis=0)
    if mode == "PN":
        xc = x - col_mean
        rownorm_mean = jnp.sqrt(1e-6 + (xc ** 2).sum(axis=1).mean())
        return scale * xc / rownorm_mean
    if mode == "PN-SI":
        xc = x - col_mean
        rownorm_ind = jnp.sqrt(1e-6 + (xc ** 2).sum(axis=1, keepdims=True))
        return scale * xc / rownorm_ind
    rownorm_ind = jnp.sqrt(1e-6 + (x ** 2).sum(axis=1, keepdims=True))
    return scale * x / rownorm_ind - col_mean


if __name__ == "__main__":
    ok = True

    def _check(x, mode, scale, block_rows=None):
        out = jax.block_until_ready(
            pair_norm(x, mode=mode, scale=scale, block_rows=block_rows))
        ref = _pair_norm_ref(x, mode=mode, scale=scale)
        return bool(jnp.allclose(out, ref, atol=1e-4, rtol=1e-4))

    k0, k1, k2, k3 = jax.random.split(jax.random.PRNGKey(0), 4)

    # Packed path (D=32 -> k=4 rows per 128-lane row), N a multiple of k.
    x = jax.random.normal(k0, (64, 32), dtype=jnp.float32)
    for mode in ["None", "PN", "PN-SI", "PN-SCS"]:
        ok &= _check(x, mode, 1.0)

    # Ragged N (zero-padded packing), forced small tile, non-unit scale.
    x2 = jax.random.normal(k1, (50, 32), dtype=jnp.float32)
    for mode in ["PN", "PN-SI", "PN-SCS"]:
        ok &= _check(x2, mode, 2.5, block_rows=16)

    # Multi-tile streaming + sharded stats reduction (two partial accumulators,
    # duplicated clamped edge tile fully masked).
    x3 = jax.random.normal(k2, (300, 32), dtype=jnp.float32)
    for mode in ["PN", "PN-SI", "PN-SCS"]:
        ok &= _check(x3, mode, 1.5, block_rows=16)

    # Wide-feature path (no packing, k == 1).
    x4 = jax.random.normal(k3, (24, 256), dtype=jnp.float32)
    for mode in ["PN", "PN-SI", "PN-SCS"]:
        ok &= _check(x4, mode, 1.0)

    if ok:
        print("KERNEL_OK")
</pallas_src>

<mosaic_0001>
module attributes {stable_mosaic.version = 11 : i64} {
  func.func @_stats_kernel(%arg0: i32, %arg1: i32, %arg2: memref<16x128xf32, #tpu.memory_space<vmem>>, %arg3: memref<1x1x128xf32, #tpu.memory_space<vmem>>, %arg4: memref<1x1x1xf32, #tpu.memory_space<vmem>>) attributes {dimension_semantics = [#tpu.dimension_semantics<parallel>, #tpu.dimension_semantics<arbitrary>], iteration_bounds = array<i64: 1, 1>, scalar_prefetch = 0 : i64, scratch_operands = 0 : i64, tpu.core_type = #tpu.core_type<tc>, window_params = [{transform_indices = @transform_0, window_bounds = array<i64: 16, 128>}, {transform_indices = @transform_1, window_bounds = array<i64: 1, 1, 128>}, {transform_indices = @transform_2, window_bounds = array<i64: 1, 1, 1>}]} {
    %c0_i32 = arith.constant 0 : i32
    %0 = arith.cmpi eq, %arg1, %c0_i32 : i32
    %1 = arith.extui %0 : i1 to i32
    %c0_i32_0 = arith.constant 0 : i32
    %2 = arith.cmpi ne, %1, %c0_i32_0 : i32
    scf.if %2 {
      %cst_15 = arith.constant 0.000000e+00 : f32
      %24 = vector.broadcast %cst_15 : f32 to vector<1x128xf32>
      %c0_16 = arith.constant 0 : index
      %c0_17 = arith.constant 0 : index
      %c0_18 = arith.constant 0 : index
      %25 = vector.load %arg3[%c0_16, %c0_17, %c0_18] : memref<1x1x128xf32, #tpu.memory_space<vmem>>, vector<1x1x128xf32>
      %26 = vector.shape_cast %25 : vector<1x1x128xf32> to vector<1x128xf32>
      %27 = vector.shape_cast %24 : vector<1x128xf32> to vector<1x1x128xf32>
      tpu.vector_store %arg3[%c0_16, %c0_17, %c0_18], %27 {strides = array<i32>} : memref<1x1x128xf32, #tpu.memory_space<vmem>>, vector<1x1x128xf32>,
      %cst_19 = arith.constant 0.000000e+00 : f32
      %28 = vector.broadcast %cst_19 : f32 to vector<1x1xf32>
      %c0_20 = arith.constant 0 : index
      %c0_21 = arith.constant 0 : index
      %c0_22 = arith.constant 0 : index
      %29 = vector.load %arg4[%c0_20, %c0_21, %c0_22] : memref<1x1x1xf32, #tpu.memory_space<vmem>>, vector<1x1x1xf32>
      %30 = vector.shape_cast %29 : vector<1x1x1xf32> to vector<1x1xf32>
      %31 = vector.shape_cast %28 : vector<1x1xf32> to vector<1x1x1xf32>
      tpu.vector_store %arg4[%c0_20, %c0_21, %c0_22], %31 {strides = array<i32>} : memref<1x1x1xf32, #tpu.memory_space<vmem>>, vector<1x1x1xf32>,
    } else {
    }
    %c0 = arith.constant 0 : index
    %c0_1 = arith.constant 0 : index
    %3 = vector.load %arg2[%c0, %c0_1] : memref<16x128xf32, #tpu.memory_space<vmem>>, vector<16x128xf32>
    %c0_2 = arith.constant 0 : index
    %c0_3 = arith.constant 0 : index
    %c0_4 = arith.constant 0 : index
    %4 = vector.load %arg3[%c0_2, %c0_3, %c0_4] : memref<1x1x128xf32, #tpu.memory_space<vmem>>, vector<1x1x128xf32>
    %5 = vector.shape_cast %4 : vector<1x1x128xf32> to vector<1x128xf32>
    %cst = arith.constant dense<0.000000e+00> : vector<128xf32>
    %6 = vector.multi_reduction <add>, %3, %cst [0] : vector<16x128xf32> to vector<128xf32>
    %7 = vector.shape_cast %6 : vector<128xf32> to vector<1x128xf32>
    %8 = arith.addf %5, %7 : vector<1x128xf32>
    %c0_5 = arith.constant 0 : index
    %c0_6 = arith.constant 0 : index
    %c0_7 = arith.constant 0 : index
    %9 = vector.load %arg3[%c0_5, %c0_6, %c0_7] : memref<1x1x128xf32, #tpu.memory_space<vmem>>, vector<1x1x128xf32>
    %10 = vector.shape_cast %9 : vector<1x1x128xf32> to vector<1x128xf32>
    %11 = vector.shape_cast %8 : vector<1x128xf32> to vector<1x1x128xf32>
    tpu.vector_store %arg3[%c0_5, %c0_6, %c0_7], %11 {strides = array<i32>} : memref<1x1x128xf32, #tpu.memory_space<vmem>>, vector<1x1x128xf32>,
    %c0_8 = arith.constant 0 : index
    %c0_9 = arith.constant 0 : index
    %c0_10 = arith.constant 0 : index
    %12 = vector.load %arg4[%c0_8, %c0_9, %c0_10] : memref<1x1x1xf32, #tpu.memory_space<vmem>>, vector<1x1x1xf32>
    %13 = vector.shape_cast %12 : vector<1x1x1xf32> to vector<1x1xf32>
    %14 = arith.mulf %3, %3 : vector<16x128xf32>
    %15 = vector.shape_cast %14 : vector<16x128xf32> to vector<1x16x128xf32>
    %cst_11 = arith.constant dense<0.000000e+00> : vector<1xf32>
    %16 = vector.multi_reduction <add>, %15, %cst_11 [1, 2] : vector<1x16x128xf32> to vector<1xf32>
    %17 = vector.shape_cast %16 : vector<1xf32> to vector<1x1x1xf32>
    %18 = vector.extract %17[0, 0, 0] : f32 from vector<1x1x1xf32>
    %19 = vector.broadcast %18 : f32 to vector<1x1xf32>
    %20 = arith.addf %13, %19 : vector<1x1xf32>
    %c0_12 = arith.constant 0 : index
    %c0_13 = arith.constant 0 : index
    %c0_14 = arith.constant 0 : index
    %21 = vector.load %arg4[%c0_12, %c0_13, %c0_14] : memref<1x1x1xf32, #tpu.memory_space<vmem>>, vector<1x1x1xf32>
    %22 = vector.shape_cast %21 : vector<1x1x1xf32> to vector<1x1xf32>
    %23 = vector.shape_cast %20 : vector<1x1xf32> to vector<1x1x1xf32>
    tpu.vector_store %arg4[%c0_12, %c0_13, %c0_14], %23 {strides = array<i32>} : memref<1x1x1xf32, #tpu.memory_space<vmem>>, vector<1x1x1xf32>,
    return
  }
  func.func @transform_0(%arg0: i32, %arg1: i32) -> (i32, i32) {
    %c1_i32 = arith.constant 1 : i32
    %0 = arith.muli %arg0, %c1_i32 : i32
    %1 = arith.addi %0, %arg1 : i32
    %c0_i32 = arith.constant 0 : i32
    %2 = arith.minsi %1, %c0_i32 : i32
    %c0_i32_0 = arith.constant 0 : i32
    %c0_i32_1 = arith.constant 0 : i32
    return %2, %c0_i32_0 : i32, i32
  }
  func.func @transform_1(%arg0: i32, %arg1: i32) -> (i32, i32, i32) {
    %c0_i32 = arith.constant 0 : i32
    %c0_i32_0 = arith.constant 0 : i32
    %c0_i32_1 = arith.constant 0 : i32
    return %arg0, %c0_i32, %c0_i32_0 : i32, i32, i32
  }
  func.func @transform_2(%arg0: i32, %arg1: i32) -> (i32, i32, i32) {
    %c0_i32 = arith.constant 0 : i32
    %c0_i32_0 = arith.constant 0 : i32
    %c0_i32_1 = arith.constant 0 : i32
    return %arg0, %c0_i32, %c0_i32_0 : i32, i32, i32
  }
}

</mosaic_0001>

<bundles_post_ra>
// kernel: tpu_custom_call.1
= control target key start
LH: loop header
LB: loop body
LE: loop exit
PB: predicated region body
PF: predicated region fallthrough
CT: control target
= control target key end

     0   :  { %8 = vsyncpa [#allocation3], 0  ;;  %s242_s0 = inlined_call_operand.hbm [shape: f32[16,128], index: 0, kind: input, shape index: {}]   ;;  %s243_s1 = inlined_call_operand.hbm [shape: f32[1,1,128], index: 1, kind: output, shape index: {0}]   ;;  %s244_s2 = inlined_call_operand.hbm [shape: f32[1,1,1], index: 2, kind: output, shape index: {1}]  }
   0x1   :  { %9 = vsyncpa [#allocation4], 0 }
   0x2   :  { %10 = vsyncpa [#allocation7], 0  ;;  %s183_s9 = smov [#allocation2]   ;;  %s111_s13 = scalar_lea.hbm %s242_s0, 256 }
   0x3   :  { %s22_s10 = sshll.u32 %s183_s9, 4  ;;  %p112_p0 = scmp.ne.s32.totalorder %s242_s0, %s111_s13  ;;  %s23_s10 = int_to_ptr.vmem [resolvable:$true] %s22_s10 }
   0x4   :  { %p115_p1 = scmp.lt.u32.totalorder %s111_s13, %s242_s0 }
   0x6   :  { %p117_p2 = pnand %p115_p1, %p112_p0 }
   0x8   :  { %120 = shalt.err (!%p117_p2)
}
   0x9   :  { %s121_s18 = scalar_lea.vmem %s23_s10, 256  ;;  %p126_p4 = scmp.lt.s32.totalorder %s23_s10, %s23_s10 }
   0xa   :  { %p122_p3 = scmp.ne.s32.totalorder %s23_s10, %s121_s18  ;;  %p127_p5 = scmp.lt.s32.totalorder %s121_s18, %s121_s18 }
   0xc   :  { %p128_p6 = por %p127_p5, %p126_p4 }
   0xe   :  { %p129_p7 = pnand %p128_p6, %p122_p3 }
  0x10   :  { %132 = shalt.err (!%p129_p7)
}
  0x11   :  { %s184_s19 = smov 128   ;;  %s185_s20 = smov 8  }
  0x12   :  { %28 = dma.hbm_to_vmem [thread:$0]  %s242_s0, 256, %s23_s10, [#allocation3], %s184_s19, %s184_s19, %s185_s20  }
  0x13   :  { %177 = dma.done.wait [#allocation3], 256  }
  0x14   :  { %178 = vsyncadd [#allocation3], 4294967040  ;;  %v43_v0 = vld [vmem:[#allocation2] sm:$0xff]  ;;  %v44_v1 = vld [vmem:[#allocation2 + $0x8] sm:$0xff]  ;;  %vm41_vm0 = vcmask 0   ;;  %v186_v6 = vmov 0.0  }
  0x15   :  { %v46_v2 = vadd.f32 %v44_v1, %v43_v0  ;;  %v56_v3 = vmul.f32 %v43_v0, %v43_v0  ;;  %v57_v4 = vmul.f32 %v44_v1, %v44_v1  ;;  %42 = vst.msk [vmem:[#allocation6] sm:$0x1] %vm41_vm0, %v186_v6  ;;  %40 = vst [vmem:[#allocation5] sm:$0x1] %v186_v6  ;;  %s187_s0 = smov [#allocation5]  }
  0x16   :  { %s78_s23 = sshll.u32 %s187_s0, 4  ;;  %s79_s23 = int_to_ptr.vmem [resolvable:$true] %s78_s23 }
  0x17   :  { %v58_v5 = vadd.f32 %v57_v4, %v56_v3  ;;  %v47_v7 = vrot.slane %v46_v2, 4  ;;  %s133_s24 = scalar_lea.vmem %s79_s23, 16  ;;  %s137_s25 = scalar_lea.vmem %s79_s23, 32 }
  0x18   :  { %p134_p8 = scmp.ne.s32.totalorder %s79_s23, %s133_s24  ;;  %p138_p9 = scmp.lt.s32.totalorder %s79_s23, %s79_s23 }
  0x19   :  { %59 = vadd.xlane.f32.xlu0 %v58_v5  ;;  %v48_v8 = vadd.f32 %v47_v7, %v46_v2  ;;  %p139_p10 = scmp.lt.s32.totalorder %s137_s25, %s133_s24 }
  0x1b   :  { %v49_v9 = vrot.slane %v48_v8, 2  ;;  %p140_p11 = por %p139_p10, %p138_p9 }
  0x1c   :  { %v45_v13 = vld [vmem:[#allocation5] sm:$0x1] }
  0x1d   :  { %v50_v10 = vadd.f32 %v49_v9, %v48_v8  ;;  %p141_p12 = pnand %p140_p11, %p134_p8 }
  0x1f   :  { %v51_v11 = vrot.slane %v50_v10, 1 }
  0x21   :  { %v52_v12 = vadd.f32 %v51_v11, %v50_v10 }
  0x23   :  { %v53_v14 = vadd.f32 %v52_v12, %v45_v13 }
  0x25   :  { %54 = vst [vmem:[#allocation5] sm:$0x1] %v53_v14 }
  0x26   :  { %144 = shalt.err (!%p141_p12)
}
  0x27   :  { %s145_s28 = scalar_lea.hbm %s243_s1, 16 }
  0x28   :  { %p146_p13 = scmp.ne.s32.totalorder %s243_s1, %s145_s28  ;;  %p149_p0 = scmp.lt.u32.totalorder %s145_s28, %s243_s1 }
  0x2a   :  { %p151_p1 = pnand %p149_p0, %p146_p13 }
  0x2c   :  { %154 = shalt.err (!%p151_p1)
}
  0x2d   :  { %81 = dma.vmem_to_hbm [thread:$0]  %s79_s23, 16, %s243_s1, [#allocation4]   ;;  %v55_v22 = vld [vmem:[#allocation6] sm:$0x1] }
  0x2e   :  { %s188_s7 = smov [#allocation6]  }
  0x2f   :  { %s88_s8 = sshll.u32 %s188_s7, 4  ;;  %s89_s8 = int_to_ptr.vmem [resolvable:$true] %s88_s8 }
  0x30   :  { %s155_s10 = scalar_lea.vmem %s89_s8, 16  ;;  %s159_s1 = scalar_lea.vmem %s89_s8, 32 }
  0x31   :  { %p156_p2 = scmp.ne.s32.totalorder %s89_s8, %s155_s10  ;;  %p160_p3 = scmp.lt.s32.totalorder %s89_s8, %s89_s8 }
  0x32   :  { %p161_p4 = scmp.lt.s32.totalorder %s159_s1, %s155_s10 }
  0x34   :  { %p162_p5 = por %p161_p4, %p160_p3 }
  0x36   :  { %p163_p6 = pnand %p162_p5, %p156_p2 }
  0xa6   :  { %v60_v15 = vpop.xlane.xlu0 %59 }
  0xa7   :  { %v61_v16 = vrot.slane %v60_v15, 4 }
  0xa9   :  { %v62_v17 = vadd.f32 %v61_v16, %v60_v15 }
  0xab   :  { %v63_v18 = vrot.slane %v62_v17, 2 }
  0xad   :  { %v64_v19 = vadd.f32 %v63_v18, %v62_v17 }
  0xaf   :  { %v65_v20 = vrot.slane %v64_v19, 1 }
  0xb1   :  { %v66_v21 = vadd.f32 %v65_v20, %v64_v19 }
  0xb3   :  { %103 = vpush %v66_v21 }
  0xe4   :  { %s104_s9 = spop %103 }
  0xe5   :  { %v68_v23 = vstv %s104_s9 }
  0xe6   :  { %v69_v24 = vadd.f32 %v68_v23, %v55_v22 }
  0xe8   :  { %71 = vst.msk [vmem:[#allocation6] sm:$0x1] %vm41_vm0, %v69_v24 }
  0xe9   :  { %166 = shalt.err (!%p163_p6)
}
  0xea   :  { %s167_s13 = scalar_lea.hbm %s244_s2, 16 }
  0xeb   :  { %p168_p7 = scmp.ne.s32.totalorder %s244_s2, %s167_s13  ;;  %p171_p8 = scmp.lt.u32.totalorder %s167_s13, %s244_s2 }
  0xed   :  { %p173_p9 = pnand %p171_p8, %p168_p7 }
  0xef   :  { %176 = shalt.err (!%p173_p9)
}
  0xf0   :  { %91 = dma.vmem_to_hbm [thread:$0]  %s89_s8, 16, %s244_s2, [#allocation7]  }
  0xf1   :  { %179 = dma.done.wait [#allocation4], 16  }
  0xf2   :  { %180 = vsyncadd [#allocation4], 4294967280 }
  0xf3   :  { %181 = dma.done.wait [#allocation7], 16  }
  0xf4   :  { %182 = vsyncadd [#allocation7], 4294967280 }
  0xf5   :  { %98 = vsyncpa [#allocation3], 1 }
  0xf6   :  { %99 = vsyncpa [#allocation4], 1 }
  0xf7   :  { %100 = vsyncpa [#allocation7], 1 }

</bundles_post_ra>
